<compile_context>
chip_gen: v7x
topology: tpu7x:2x2x1
jax: 0.10.0
libtpu: 0.0.40
codegen_flags: <defaults>
</compile_context>

<pallas_src>
import functools

import numpy as np
import jax
import jax.numpy as jnp
from jax import lax
from jax.experimental import pallas as pl
from jax.experimental.pallas import tpu as pltpu

K_MARGIN = 0.05          # the `K` constant from the PyTorch file
WINDOW = 11              # pytorch_ssim default window size
SIGMA = 1.5              # pytorch_ssim default sigma
PAD = WINDOW // 2
C1 = 0.01 ** 2
C2 = 0.03 ** 2
N_STACK = 5              # img, adv, img^2, adv^2, img*adv


def _gaussian_1d():
    xs = np.arange(WINDOW) - WINDOW // 2
    g = np.exp(-(xs.astype(np.float64) ** 2) / (2.0 * SIGMA ** 2))
    return g / g.sum()


def _band_matrix(n):
    # m[i, j] = g[j - i + PAD]  =>  (m @ z)[i] == zero-padded "same" 1-D gaussian
    # conv of z along that axis (edge rows have truncated taps == zero padding).
    g = _gaussian_1d()
    m = np.zeros((n, n), dtype=np.float64)
    for i in range(n):
        for j in range(max(0, i - PAD), min(n, i + PAD + 1)):
            m[i, j] = g[j - i + PAD]
    return m


def my_loss_kernel(x_ref, y_ref, img_ref, dlt_ref, ghb_ref, gw_ref, lam_ref,
                   out_ref,
                   ssim_acc, l2_acc, tvh_acc, tvw_acc, atk_acc,
                   *, B, NCLS, CC, H, W):
    b = pl.program_id(0)
    R = CC * H

    # ----------------- init accumulators + batch attack term (step 0) -------
    @pl.when(b == 0)
    def _init():
        zero = jnp.zeros((1, 1), jnp.float32)
        ssim_acc[...] = zero
        l2_acc[...] = zero
        tvh_acc[...] = zero
        tvw_acc[...] = zero
        # loss_attack depends only on (x, y) which are tiny; compute batch-sum once.
        x = x_ref[...]                                   # (B, NCLS) f32
        y = y_ref[...]                                   # (B, 1) int32
        cls_idx = lax.broadcasted_iota(jnp.int32, (B, NCLS), 1)
        is_true = cls_idx == y
        true_logit = jnp.sum(jnp.where(is_true, x, 0.0), axis=1, keepdims=True)
        # finfo.min sentinel: any representable f32 logit beats it (== -inf behavior)
        neg = jnp.finfo(jnp.float32).min
        rest_max = jnp.max(jnp.where(is_true, neg, x), axis=1, keepdims=True)
        attack = jnp.maximum(true_logit - rest_max + K_MARGIN, 0.0)   # (B, 1)
        atk_acc[...] = jnp.sum(attack, axis=0, keepdims=True)         # (1, 1)

    # ----------------- per-image SSIM / L2 / TV partial sums ----------------
    img = img_ref[...].reshape(R, W)                     # (CC*H, W)
    dlt = dlt_ref[...].reshape(R, W)
    adv = img + dlt

    # Stack the 5 quantities along rows and blur them with two MXU matmuls:
    #   blurred = G_h_block @ (z @ G_w)   (zero padding baked into the matrices)
    z = jnp.concatenate([img, adv, img * img, adv * adv, img * adv], axis=0)
    zw = jnp.dot(z, gw_ref[...], preferred_element_type=jnp.float32)          # (5R, W)
    blurred = jnp.dot(ghb_ref[...], zw, preferred_element_type=jnp.float32)   # (5R, W)

    mu1 = blurred[0 * R:1 * R]
    mu2 = blurred[1 * R:2 * R]
    mu1_sq = mu1 * mu1
    mu2_sq = mu2 * mu2
    mu1_mu2 = mu1 * mu2
    sigma1_sq = blurred[2 * R:3 * R] - mu1_sq
    sigma2_sq = blurred[3 * R:4 * R] - mu2_sq
    sigma12 = blurred[4 * R:5 * R] - mu1_mu2
    ssim_map = ((2.0 * mu1_mu2 + C1) * (2.0 * sigma12 + C2)) / (
        (mu1_sq + mu2_sq + C1) * (sigma1_sq + sigma2_sq + C2))

    def s11(a):
        # full sum, kept as a (1, 1) vector (no 0-d scalars in the kernel)
        a2 = a.reshape(-1, a.shape[-1])
        s = jnp.sum(a2, axis=0, keepdims=True)
        return jnp.sum(s, axis=1, keepdims=True)

    adv3 = adv.reshape(CC, H, W)
    dh = adv3[:, 1:, :] - adv3[:, :-1, :]                # (CC, H-1, W)
    dw = adv3[:, :, 1:] - adv3[:, :, :-1]                # (CC, H, W-1)

    ssim_acc[...] += s11(ssim_map)
    l2_acc[...] += s11(dlt * dlt)
    tvh_acc[...] += s11(dh * dh)
    tvw_acc[...] += s11(dw * dw)

    # ----------------- finalize (last grid step) -----------------------------
    @pl.when(b == pl.num_programs(0) - 1)
    def _finalize():
        n_pix = float(B * CC * H * W)
        lam1 = lam_ref[0]
        lam2 = lam_ref[1]
        loss_ssim = 0.01 * lam1 * (1.0 - ssim_acc[...] / n_pix)
        loss_l2 = 0.5 * lam2 * jnp.sqrt(l2_acc[...])
        loss_var = 500.0 * (jnp.sqrt(tvh_acc[...]) + jnp.sqrt(tvw_acc[...])) / n_pix
        out_ref[...] = atk_acc[...] / float(B) + loss_ssim + loss_l2 + loss_var


def my_loss(x, y, delta, images, lam1, lam2):
    B, NCLS = x.shape
    _, CC, H, W = images.shape
    R = CC * H

    # Banded Gaussian matrices (built once at trace time with numpy).
    # G_h is block-diagonal (one copy per stacked quantity and per channel);
    # note it is (5*CC*H)^2 floats, sized for small/moderate H (e.g. MNIST 28).
    gh_block = np.kron(np.eye(N_STACK * CC), _band_matrix(H)).astype(np.float32)
    gw_right = _band_matrix(W).T.astype(np.float32)

    y2 = y.astype(jnp.int32).reshape(B, 1)
    lam = jnp.array([lam1, lam2], dtype=jnp.float32)

    kernel = functools.partial(my_loss_kernel, B=B, NCLS=NCLS, CC=CC, H=H, W=W)
    out = pl.pallas_call(
        kernel,
        out_shape=jax.ShapeDtypeStruct((1, 1), jnp.float32),
        grid=(B,),
        in_specs=[
            pl.BlockSpec((B, NCLS), lambda b: (0, 0)),            # x (tiny, full)
            pl.BlockSpec((B, 1), lambda b: (0, 0)),               # y (tiny, full)
            pl.BlockSpec((1, CC, H, W), lambda b: (b, 0, 0, 0)),  # images[b]
            pl.BlockSpec((1, CC, H, W), lambda b: (b, 0, 0, 0)),  # delta[b]
            pl.BlockSpec((N_STACK * R, N_STACK * R), lambda b: (0, 0)),  # G_h block-diag
            pl.BlockSpec((W, W), lambda b: (0, 0)),               # G_w
            pl.BlockSpec(memory_space=pltpu.MemorySpace.SMEM),    # [lam1, lam2]
        ],
        out_specs=pl.BlockSpec((1, 1), lambda b: (0, 0)),
        scratch_shapes=[pltpu.VMEM((1, 1), jnp.float32)] * 5,     # ssim/l2/tvh/tvw/attack
        compiler_params=pltpu.CompilerParams(
            dimension_semantics=("arbitrary",),                   # carries accumulators
            vmem_limit_bytes=32 * 1024 * 1024),
    )(x.astype(jnp.float32), y2, images.astype(jnp.float32),
      delta.astype(jnp.float32), jnp.asarray(gh_block), jnp.asarray(gw_right), lam)
    return out[0, 0]


# ------------------------- pure-JAX reference -------------------------------
def my_loss_ref(x, y, delta, images, lam1, lam2):
    B, NCLS = x.shape
    _, CC, H, W = images.shape
    onehot = jax.nn.one_hot(y, NCLS, dtype=jnp.bool_)
    true_logit = jnp.sum(jnp.where(onehot, x, 0.0), axis=1)
    rest_max = jnp.max(jnp.where(onehot, -jnp.inf, x), axis=1)
    loss_attack = jax.nn.relu(true_logit - rest_max + K_MARGIN)

    img2 = images + delta
    g = jnp.asarray(_gaussian_1d(), dtype=jnp.float32)
    w2d = jnp.outer(g, g).reshape(1, 1, WINDOW, WINDOW)
    w2d = jnp.tile(w2d, (CC, 1, 1, 1))

    def conv(z):
        return jax.lax.conv_general_dilated(
            z, w2d, (1, 1), [(PAD, PAD), (PAD, PAD)],
            dimension_numbers=("NCHW", "OIHW", "NCHW"),
            feature_group_count=CC)

    mu1, mu2 = conv(images), conv(img2)
    s1 = conv(images * images) - mu1 * mu1
    s2 = conv(img2 * img2) - mu2 * mu2
    s12 = conv(images * img2) - mu1 * mu2
    ssim_map = ((2 * mu1 * mu2 + C1) * (2 * s12 + C2)) / (
        (mu1 * mu1 + mu2 * mu2 + C1) * (s1 + s2 + C2))
    loss_ssim = 0.01 * lam1 * (1.0 - jnp.mean(ssim_map))
    loss_l2 = 0.5 * lam2 * jnp.sqrt(jnp.sum(delta * delta))
    dh = img2[:, :, 1:, :] - img2[:, :, :-1, :]
    dw = img2[:, :, :, 1:] - img2[:, :, :, :-1]
    loss_var = 500.0 * (jnp.sqrt(jnp.sum(dh * dh)) +
                        jnp.sqrt(jnp.sum(dw * dw))) / (B * CC * H * W)
    return jnp.mean(loss_attack + loss_ssim + loss_l2) + loss_var


if __name__ == "__main__":
    key = jax.random.PRNGKey(0)
    k1, k2, k3, k4 = jax.random.split(key, 4)

    B, NCLS, CC, H, W = 2, 10, 1, 16, 16
    x = jax.random.normal(k1, (B, NCLS), dtype=jnp.float32)
    y = jax.random.randint(k2, (B,), 0, NCLS, dtype=jnp.int32)
    images = jax.random.uniform(k3, (B, CC, H, W), dtype=jnp.float32)
    delta = 0.05 * jax.random.normal(k4, (B, CC, H, W), dtype=jnp.float32)
    lam1, lam2 = 1.0, 1.0

    out = jax.block_until_ready(my_loss(x, y, delta, images, lam1, lam2))
    ref = jax.block_until_ready(my_loss_ref(x, y, delta, images, lam1, lam2))
    np.testing.assert_allclose(np.asarray(out), np.asarray(ref),
                               rtol=1e-3, atol=1e-3)
    print("KERNEL_OK")
</pallas_src>

<mosaic_0001>
module attributes {stable_mosaic.version = 11 : i64} {
  func.func @my_loss_kernel(%arg0: i32, %arg1: memref<2x10xf32, #tpu.memory_space<vmem>>, %arg2: memref<2x1xi32, #tpu.memory_space<vmem>>, %arg3: memref<1x1x16x16xf32, #tpu.memory_space<vmem>>, %arg4: memref<1x1x16x16xf32, #tpu.memory_space<vmem>>, %arg5: memref<80x80xf32, #tpu.memory_space<vmem>>, %arg6: memref<16x16xf32, #tpu.memory_space<vmem>>, %arg7: memref<2xf32, #tpu.memory_space<smem>>, %arg8: memref<1x1xf32, #tpu.memory_space<vmem>>, %arg9: memref<1x1xf32, #tpu.memory_space<vmem>>, %arg10: memref<1x1xf32, #tpu.memory_space<vmem>>, %arg11: memref<1x1xf32, #tpu.memory_space<vmem>>, %arg12: memref<1x1xf32, #tpu.memory_space<vmem>>, %arg13: memref<1x1xf32, #tpu.memory_space<vmem>>) attributes {dimension_semantics = [#tpu.dimension_semantics<arbitrary>], iteration_bounds = array<i64: 2>, scalar_prefetch = 0 : i64, scratch_operands = 5 : i64, tpu.core_type = #tpu.core_type<tc>, window_params = [{pipeline_mode = #tpu.pipeline_mode<synchronous>, transform_indices = @transform_0, window_bounds = array<i64: 2, 10>}, {pipeline_mode = #tpu.pipeline_mode<synchronous>, transform_indices = @transform_1, window_bounds = array<i64: 2, 1>}, {transform_indices = @transform_2, window_bounds = array<i64: 1, 1, 16, 16>}, {transform_indices = @transform_3, window_bounds = array<i64: 1, 1, 16, 16>}, {pipeline_mode = #tpu.pipeline_mode<synchronous>, transform_indices = @transform_4, window_bounds = array<i64: 80, 80>}, {pipeline_mode = #tpu.pipeline_mode<synchronous>, transform_indices = @transform_5, window_bounds = array<i64: 16, 16>}, {transform_indices = @transform_6, window_bounds = array<i64: 2>}, {pipeline_mode = #tpu.pipeline_mode<synchronous>, transform_indices = @transform_7, window_bounds = array<i64: 1, 1>}]} {
    %c0_i32 = arith.constant 0 : i32
    %0 = arith.cmpi eq, %arg0, %c0_i32 : i32
    %1 = arith.extui %0 : i1 to i32
    %c0_i32_0 = arith.constant 0 : i32
    %2 = arith.cmpi ne, %1, %c0_i32_0 : i32
    scf.if %2 {
      %cst_44 = arith.constant 0.000000e+00 : f32
      %87 = vector.broadcast %cst_44 : f32 to vector<1x1xf32>
      %c0_45 = arith.constant 0 : index
      %c0_46 = arith.constant 0 : index
      %88 = vector.load %arg9[%c0_45, %c0_46] : memref<1x1xf32, #tpu.memory_space<vmem>>, vector<1x1xf32>
      tpu.vector_store %arg9[%c0_45, %c0_46], %87 {strides = array<i32>} : memref<1x1xf32, #tpu.memory_space<vmem>>, vector<1x1xf32>,
      %c0_47 = arith.constant 0 : index
      %c0_48 = arith.constant 0 : index
      %89 = vector.load %arg10[%c0_47, %c0_48] : memref<1x1xf32, #tpu.memory_space<vmem>>, vector<1x1xf32>
      tpu.vector_store %arg10[%c0_47, %c0_48], %87 {strides = array<i32>} : memref<1x1xf32, #tpu.memory_space<vmem>>, vector<1x1xf32>,
      %c0_49 = arith.constant 0 : index
      %c0_50 = arith.constant 0 : index
      %90 = vector.load %arg11[%c0_49, %c0_50] : memref<1x1xf32, #tpu.memory_space<vmem>>, vector<1x1xf32>
      tpu.vector_store %arg11[%c0_49, %c0_50], %87 {strides = array<i32>} : memref<1x1xf32, #tpu.memory_space<vmem>>, vector<1x1xf32>,
      %c0_51 = arith.constant 0 : index
      %c0_52 = arith.constant 0 : index
      %91 = vector.load %arg12[%c0_51, %c0_52] : memref<1x1xf32, #tpu.memory_space<vmem>>, vector<1x1xf32>
      tpu.vector_store %arg12[%c0_51, %c0_52], %87 {strides = array<i32>} : memref<1x1xf32, #tpu.memory_space<vmem>>, vector<1x1xf32>,
      %c0_53 = arith.constant 0 : index
      %c0_54 = arith.constant 0 : index
      %92 = vector.load %arg1[%c0_53, %c0_54] : memref<2x10xf32, #tpu.memory_space<vmem>>, vector<2x10xf32>
      %c0_55 = arith.constant 0 : index
      %c0_56 = arith.constant 0 : index
      %93 = vector.load %arg2[%c0_55, %c0_56] : memref<2x1xi32, #tpu.memory_space<vmem>>, vector<2x1xi32>
      %94 = tpu.iota {dimensions = array<i32: 1>} : vector<2x10xi32>
      %95 = vector.broadcast %93 : vector<2x1xi32> to vector<2x10xi32>
      %96 = arith.cmpi eq, %94, %95 : vector<2x10xi32>
      %cst_57 = arith.constant 0.000000e+00 : f32
      %97 = vector.broadcast %cst_57 : f32 to vector<2x10xf32>
      %98 = arith.select %96, %92, %97 : vector<2x10xi1>, vector<2x10xf32>
      %cst_58 = arith.constant dense<0.000000e+00> : vector<2xf32>
      %99 = vector.multi_reduction <add>, %98, %cst_58 [1] : vector<2x10xf32> to vector<2xf32>
      %100 = vector.shape_cast %99 : vector<2xf32> to vector<2x1xf32>
      %cst_59 = arith.constant -3.40282347E+38 : f32
      %101 = vector.broadcast %cst_59 : f32 to vector<2x10xf32>
      %102 = arith.select %96, %101, %92 : vector<2x10xi1>, vector<2x10xf32>
      %cst_60 = arith.constant dense<0xFF800000> : vector<2xf32>
      %103 = vector.multi_reduction <maximumf>, %102, %cst_60 [1] : vector<2x10xf32> to vector<2xf32>
      %104 = vector.shape_cast %103 : vector<2xf32> to vector<2x1xf32>
      %105 = arith.subf %100, %104 : vector<2x1xf32>
      %cst_61 = arith.constant 5.000000e-02 : f32
      %106 = vector.broadcast %cst_61 : f32 to vector<2x1xf32>
      %107 = arith.addf %105, %106 : vector<2x1xf32>
      %cst_62 = arith.constant 0.000000e+00 : f32
      %108 = vector.broadcast %cst_62 : f32 to vector<2x1xf32>
      %109 = arith.maximumf %107, %108 : vector<2x1xf32>
      %cst_63 = arith.constant dense<0.000000e+00> : vector<1xf32>
      %110 = vector.multi_reduction <add>, %109, %cst_63 [0] : vector<2x1xf32> to vector<1xf32>
      %111 = vector.shape_cast %110 : vector<1xf32> to vector<1x1xf32>
      %c0_64 = arith.constant 0 : index
      %c0_65 = arith.constant 0 : index
      %112 = vector.load %arg13[%c0_64, %c0_65] : memref<1x1xf32, #tpu.memory_space<vmem>>, vector<1x1xf32>
      tpu.vector_store %arg13[%c0_64, %c0_65], %111 {strides = array<i32>} : memref<1x1xf32, #tpu.memory_space<vmem>>, vector<1x1xf32>,
    } else {
    }
    %c0 = arith.constant 0 : index
    %c0_1 = arith.constant 0 : index
    %c0_2 = arith.constant 0 : index
    %c0_3 = arith.constant 0 : index
    %3 = vector.load %arg3[%c0, %c0_1, %c0_2, %c0_3] : memref<1x1x16x16xf32, #tpu.memory_space<vmem>>, vector<1x1x16x16xf32>
    %4 = vector.shape_cast %3 : vector<1x1x16x16xf32> to vector<16x16xf32>
    %c0_4 = arith.constant 0 : index
    %c0_5 = arith.constant 0 : index
    %c0_6 = arith.constant 0 : index
    %c0_7 = arith.constant 0 : index
    %5 = vector.load %arg4[%c0_4, %c0_5, %c0_6, %c0_7] : memref<1x1x16x16xf32, #tpu.memory_space<vmem>>, vector<1x1x16x16xf32>
    %6 = vector.shape_cast %5 : vector<1x1x16x16xf32> to vector<16x16xf32>
    %7 = arith.addf %4, %6 : vector<16x16xf32>
    %8 = arith.mulf %4, %4 : vector<16x16xf32>
    %9 = arith.mulf %7, %7 : vector<16x16xf32>
    %10 = arith.mulf %4, %7 : vector<16x16xf32>
    %11 = tpu.concatenate %4, %7, %8, %9, %10 in 0 : vector<16x16xf32>, vector<16x16xf32>, vector<16x16xf32>, vector<16x16xf32>, vector<16x16xf32> -> vector<80x16xf32>
    %c0_8 = arith.constant 0 : index
    %c0_9 = arith.constant 0 : index
    %12 = vector.load %arg6[%c0_8, %c0_9] : memref<16x16xf32, #tpu.memory_space<vmem>>, vector<16x16xf32>
    %cst = arith.constant dense<0.000000e+00> : vector<80x16xf32>
    %13 = tpu.matmul %11, %12, %cst {dimension_numbers = #tpu.dot_dimension_numbers<[1], [0], [0], [1], [0, 0, 1, 1], [], []>} : vector<80x16xf32>, vector<16x16xf32>, vector<80x16xf32> -> vector<80x16xf32>
    %c0_10 = arith.constant 0 : index
    %c0_11 = arith.constant 0 : index
    %14 = vector.load %arg5[%c0_10, %c0_11] : memref<80x80xf32, #tpu.memory_space<vmem>>, vector<80x80xf32>
    %cst_12 = arith.constant dense<0.000000e+00> : vector<80x16xf32>
    %15 = tpu.matmul %14, %13, %cst_12 {dimension_numbers = #tpu.dot_dimension_numbers<[1], [0], [0], [1], [0, 0, 1, 1], [], []>} : vector<80x80xf32>, vector<80x16xf32>, vector<80x16xf32> -> vector<80x16xf32>
    %16 = vector.extract_strided_slice %15 {offsets = [0, 0], sizes = [16, 16], strides = [1, 1]} : vector<80x16xf32> to vector<16x16xf32>
    %17 = vector.extract_strided_slice %15 {offsets = [16, 0], sizes = [16, 16], strides = [1, 1]} : vector<80x16xf32> to vector<16x16xf32>
    %18 = arith.mulf %16, %16 : vector<16x16xf32>
    %19 = arith.mulf %17, %17 : vector<16x16xf32>
    %20 = arith.mulf %16, %17 : vector<16x16xf32>
    %21 = vector.extract_strided_slice %15 {offsets = [32, 0], sizes = [16, 16], strides = [1, 1]} : vector<80x16xf32> to vector<16x16xf32>
    %22 = arith.subf %21, %18 : vector<16x16xf32>
    %23 = vector.extract_strided_slice %15 {offsets = [48, 0], sizes = [16, 16], strides = [1, 1]} : vector<80x16xf32> to vector<16x16xf32>
    %24 = arith.subf %23, %19 : vector<16x16xf32>
    %25 = vector.extract_strided_slice %15 {offsets = [64, 0], sizes = [16, 16], strides = [1, 1]} : vector<80x16xf32> to vector<16x16xf32>
    %26 = arith.subf %25, %20 : vector<16x16xf32>
    %cst_13 = arith.constant 2.000000e+00 : f32
    %27 = vector.broadcast %cst_13 : f32 to vector<16x16xf32>
    %28 = arith.mulf %27, %20 : vector<16x16xf32>
    %cst_14 = arith.constant 9.99999974E-5 : f32
    %29 = vector.broadcast %cst_14 : f32 to vector<16x16xf32>
    %30 = arith.addf %28, %29 : vector<16x16xf32>
    %cst_15 = arith.constant 2.000000e+00 : f32
    %31 = vector.broadcast %cst_15 : f32 to vector<16x16xf32>
    %32 = arith.mulf %31, %26 : vector<16x16xf32>
    %cst_16 = arith.constant 8.99999984E-4 : f32
    %33 = vector.broadcast %cst_16 : f32 to vector<16x16xf32>
    %34 = arith.addf %32, %33 : vector<16x16xf32>
    %35 = arith.mulf %30, %34 : vector<16x16xf32>
    %36 = arith.addf %18, %19 : vector<16x16xf32>
    %cst_17 = arith.constant 9.99999974E-5 : f32
    %37 = vector.broadcast %cst_17 : f32 to vector<16x16xf32>
    %38 = arith.addf %36, %37 : vector<16x16xf32>
    %39 = arith.addf %22, %24 : vector<16x16xf32>
    %cst_18 = arith.constant 8.99999984E-4 : f32
    %40 = vector.broadcast %cst_18 : f32 to vector<16x16xf32>
    %41 = arith.addf %39, %40 : vector<16x16xf32>
    %42 = arith.mulf %38, %41 : vector<16x16xf32>
    %43 = arith.divf %35, %42 : vector<16x16xf32>
    %44 = vector.shape_cast %7 : vector<16x16xf32> to vector<1x16x16xf32>
    %45 = vector.extract_strided_slice %44 {offsets = [0, 1, 0], sizes = [1, 15, 16], strides = [1, 1, 1]} : vector<1x16x16xf32> to vector<1x15x16xf32>
    %46 = vector.extract_strided_slice %44 {offsets = [0, 0, 0], sizes = [1, 15, 16], strides = [1, 1, 1]} : vector<1x16x16xf32> to vector<1x15x16xf32>
    %47 = arith.subf %45, %46 : vector<1x15x16xf32>
    %48 = vector.extract_strided_slice %44 {offsets = [0, 0, 1], sizes = [1, 16, 15], strides = [1, 1, 1]} : vector<1x16x16xf32> to vector<1x16x15xf32>
    %49 = vector.extract_strided_slice %44 {offsets = [0, 0, 0], sizes = [1, 16, 15], strides = [1, 1, 1]} : vector<1x16x16xf32> to vector<1x16x15xf32>
    %50 = arith.subf %48, %49 : vector<1x16x15xf32>
    %c0_19 = arith.constant 0 : index
    %c0_20 = arith.constant 0 : index
    %51 = vector.load %arg9[%c0_19, %c0_20] : memref<1x1xf32, #tpu.memory_space<vmem>>, vector<1x1xf32>
    %cst_21 = arith.constant dense<0.000000e+00> : vector<16xf32>
    %52 = vector.multi_reduction <add>, %43, %cst_21 [0] : vector<16x16xf32> to vector<16xf32>
    %53 = vector.shape_cast %52 : vector<16xf32> to vector<1x16xf32>
    %cst_22 = arith.constant dense<0.000000e+00> : vector<1xf32>
    %54 = vector.multi_reduction <add>, %53, %cst_22 [1] : vector<1x16xf32> to vector<1xf32>
    %55 = vector.shape_cast %54 : vector<1xf32> to vector<1x1xf32>
    %56 = arith.addf %51, %55 : vector<1x1xf32>
    %c0_23 = arith.constant 0 : index
    %c0_24 = arith.constant 0 : index
    %57 = vector.load %arg9[%c0_23, %c0_24] : memref<1x1xf32, #tpu.memory_space<vmem>>, vector<1x1xf32>
    tpu.vector_store %arg9[%c0_23, %c0_24], %56 {strides = array<i32>} : memref<1x1xf32, #tpu.memory_space<vmem>>, vector<1x1xf32>,
    %c0_25 = arith.constant 0 : index
    %c0_26 = arith.constant 0 : index
    %58 = vector.load %arg10[%c0_25, %c0_26] : memref<1x1xf32, #tpu.memory_space<vmem>>, vector<1x1xf32>
    %59 = arith.mulf %6, %6 : vector<16x16xf32>
    %cst_27 = arith.constant dense<0.000000e+00> : vector<16xf32>
    %60 = vector.multi_reduction <add>, %59, %cst_27 [0] : vector<16x16xf32> to vector<16xf32>
    %61 = vector.shape_cast %60 : vector<16xf32> to vector<1x16xf32>
    %cst_28 = arith.constant dense<0.000000e+00> : vector<1xf32>
    %62 = vector.multi_reduction <add>, %61, %cst_28 [1] : vector<1x16xf32> to vector<1xf32>
    %63 = vector.shape_cast %62 : vector<1xf32> to vector<1x1xf32>
    %64 = arith.addf %58, %63 : vector<1x1xf32>
    %c0_29 = arith.constant 0 : index
    %c0_30 = arith.constant 0 : index
    %65 = vector.load %arg10[%c0_29, %c0_30] : memref<1x1xf32, #tpu.memory_space<vmem>>, vector<1x1xf32>
    tpu.vector_store %arg10[%c0_29, %c0_30], %64 {strides = array<i32>} : memref<1x1xf32, #tpu.memory_space<vmem>>, vector<1x1xf32>,
    %c0_31 = arith.constant 0 : index
    %c0_32 = arith.constant 0 : index
    %66 = vector.load %arg11[%c0_31, %c0_32] : memref<1x1xf32, #tpu.memory_space<vmem>>, vector<1x1xf32>
    %67 = arith.mulf %47, %47 : vector<1x15x16xf32>
    %68 = vector.shape_cast %67 : vector<1x15x16xf32> to vector<15x16xf32>
    %cst_33 = arith.constant dense<0.000000e+00> : vector<16xf32>
    %69 = vector.multi_reduction <add>, %68, %cst_33 [0] : vector<15x16xf32> to vector<16xf32>
    %70 = vector.shape_cast %69 : vector<16xf32> to vector<1x16xf32>
    %cst_34 = arith.constant dense<0.000000e+00> : vector<1xf32>
    %71 = vector.multi_reduction <add>, %70, %cst_34 [1] : vector<1x16xf32> to vector<1xf32>
    %72 = vector.shape_cast %71 : vector<1xf32> to vector<1x1xf32>
    %73 = arith.addf %66, %72 : vector<1x1xf32>
    %c0_35 = arith.constant 0 : index
    %c0_36 = arith.constant 0 : index
    %74 = vector.load %arg11[%c0_35, %c0_36] : memref<1x1xf32, #tpu.memory_space<vmem>>, vector<1x1xf32>
    tpu.vector_store %arg11[%c0_35, %c0_36], %73 {strides = array<i32>} : memref<1x1xf32, #tpu.memory_space<vmem>>, vector<1x1xf32>,
    %c0_37 = arith.constant 0 : index
    %c0_38 = arith.constant 0 : index
    %75 = vector.load %arg12[%c0_37, %c0_38] : memref<1x1xf32, #tpu.memory_space<vmem>>, vector<1x1xf32>
    %76 = arith.mulf %50, %50 : vector<1x16x15xf32>
    %77 = vector.shape_cast %76 : vector<1x16x15xf32> to vector<16x15xf32>
    %cst_39 = arith.constant dense<0.000000e+00> : vector<15xf32>
    %78 = vector.multi_reduction <add>, %77, %cst_39 [0] : vector<16x15xf32> to vector<15xf32>
    %79 = vector.shape_cast %78 : vector<15xf32> to vector<1x15xf32>
    %cst_40 = arith.constant dense<0.000000e+00> : vector<1xf32>
    %80 = vector.multi_reduction <add>, %79, %cst_40 [1] : vector<1x15xf32> to vector<1xf32>
    %81 = vector.shape_cast %80 : vector<1xf32> to vector<1x1xf32>
    %82 = arith.addf %75, %81 : vector<1x1xf32>
    %c0_41 = arith.constant 0 : index
    %c0_42 = arith.constant 0 : index
    %83 = vector.load %arg12[%c0_41, %c0_42] : memref<1x1xf32, #tpu.memory_space<vmem>>, vector<1x1xf32>
    tpu.vector_store %arg12[%c0_41, %c0_42], %82 {strides = array<i32>} : memref<1x1xf32, #tpu.memory_space<vmem>>, vector<1x1xf32>,
    %c1_i32 = arith.constant 1 : i32
    %84 = arith.cmpi eq, %arg0, %c1_i32 : i32
    %85 = arith.extui %84 : i1 to i32
    %c0_i32_43 = arith.constant 0 : i32
    %86 = arith.cmpi ne, %85, %c0_i32_43 : i32
    scf.if %86 {
      %c0_44 = arith.constant 0 : index
      %87 = memref.load %arg7[%c0_44] : memref<2xf32, #tpu.memory_space<smem>>
      %c1 = arith.constant 1 : index
      %88 = memref.load %arg7[%c1] : memref<2xf32, #tpu.memory_space<smem>>
      %cst_45 = arith.constant 0.00999999977 : f32
      %89 = arith.mulf %cst_45, %87 : f32
      %c0_46 = arith.constant 0 : index
      %c0_47 = arith.constant 0 : index
      %90 = vector.load %arg9[%c0_46, %c0_47] : memref<1x1xf32, #tpu.memory_space<vmem>>, vector<1x1xf32>
      %cst_48 = arith.constant 5.120000e+02 : f32
      %91 = vector.broadcast %cst_48 : f32 to vector<1x1xf32>
      %92 = arith.divf %90, %91 : vector<1x1xf32>
      %cst_49 = arith.constant 1.000000e+00 : f32
      %93 = vector.broadcast %cst_49 : f32 to vector<1x1xf32>
      %94 = arith.subf %93, %92 : vector<1x1xf32>
      %95 = vector.broadcast %89 : f32 to vector<1x1xf32>
      %96 = arith.mulf %95, %94 : vector<1x1xf32>
      %cst_50 = arith.constant 5.000000e-01 : f32
      %97 = arith.mulf %cst_50, %88 : f32
      %c0_51 = arith.constant 0 : index
      %c0_52 = arith.constant 0 : index
      %98 = vector.load %arg10[%c0_51, %c0_52] : memref<1x1xf32, #tpu.memory_space<vmem>>, vector<1x1xf32>
      %99 = math.sqrt %98 : vector<1x1xf32>
      %100 = vector.broadcast %97 : f32 to vector<1x1xf32>
      %101 = arith.mulf %100, %99 : vector<1x1xf32>
      %c0_53 = arith.constant 0 : index
      %c0_54 = arith.constant 0 : index
      %102 = vector.load %arg11[%c0_53, %c0_54] : memref<1x1xf32, #tpu.memory_space<vmem>>, vector<1x1xf32>
      %103 = math.sqrt %102 : vector<1x1xf32>
      %c0_55 = arith.constant 0 : index
      %c0_56 = arith.constant 0 : index
      %104 = vector.load %arg12[%c0_55, %c0_56] : memref<1x1xf32, #tpu.memory_space<vmem>>, vector<1x1xf32>
      %105 = math.sqrt %104 : vector<1x1xf32>
      %106 = arith.addf %103, %105 : vector<1x1xf32>
      %cst_57 = arith.constant 5.000000e+02 : f32
      %107 = vector.broadcast %cst_57 : f32 to vector<1x1xf32>
      %108 = arith.mulf %107, %106 : vector<1x1xf32>
      %cst_58 = arith.constant 5.120000e+02 : f32
      %109 = vector.broadcast %cst_58 : f32 to vector<1x1xf32>
      %110 = arith.divf %108, %109 : vector<1x1xf32>
      %c0_59 = arith.constant 0 : index
      %c0_60 = arith.constant 0 : index
      %111 = vector.load %arg13[%c0_59, %c0_60] : memref<1x1xf32, #tpu.memory_space<vmem>>, vector<1x1xf32>
      %cst_61 = arith.constant 2.000000e+00 : f32
      %112 = vector.broadcast %cst_61 : f32 to vector<1x1xf32>
      %113 = arith.divf %111, %112 : vector<1x1xf32>
      %114 = arith.addf %113, %96 : vector<1x1xf32>
      %115 = arith.addf %114, %101 : vector<1x1xf32>
      %116 = arith.addf %115, %110 : vector<1x1xf32>
      %c0_62 = arith.constant 0 : index
      %c0_63 = arith.constant 0 : index
      %117 = vector.load %arg8[%c0_62, %c0_63] : memref<1x1xf32, #tpu.memory_space<vmem>>, vector<1x1xf32>
      tpu.vector_store %arg8[%c0_62, %c0_63], %116 {strides = array<i32>} : memref<1x1xf32, #tpu.memory_space<vmem>>, vector<1x1xf32>,
    } else {
    }
    return
  }
  func.func @transform_0(%arg0: i32) -> (i32, i32) {
    %c0_i32 = arith.constant 0 : i32
    %c0_i32_0 = arith.constant 0 : i32
    %c0_i32_1 = arith.constant 0 : i32
    return %c0_i32, %c0_i32_0 : i32, i32
  }
  func.func @transform_1(%arg0: i32) -> (i32, i32) {
    %c0_i32 = arith.constant 0 : i32
    %c0_i32_0 = arith.constant 0 : i32
    %c0_i32_1 = arith.constant 0 : i32
    return %c0_i32, %c0_i32_0 : i32, i32
  }
  func.func @transform_2(%arg0: i32) -> (i32, i32, i32, i32) {
    %c0_i32 = arith.constant 0 : i32
    %c0_i32_0 = arith.constant 0 : i32
    %c0_i32_1 = arith.constant 0 : i32
    %c0_i32_2 = arith.constant 0 : i32
    return %arg0, %c0_i32, %c0_i32_0, %c0_i32_1 : i32, i32, i32, i32
  }
  func.func @transform_3(%arg0: i32) -> (i32, i32, i32, i32) {
    %c0_i32 = arith.constant 0 : i32
    %c0_i32_0 = arith.constant 0 : i32
    %c0_i32_1 = arith.constant 0 : i32
    %c0_i32_2 = arith.constant 0 : i32
    return %arg0, %c0_i32, %c0_i32_0, %c0_i32_1 : i32, i32, i32, i32
  }
  func.func @transform_4(%arg0: i32) -> (i32, i32) {
    %c0_i32 = arith.constant 0 : i32
    %c0_i32_0 = arith.constant 0 : i32
    %c0_i32_1 = arith.constant 0 : i32
    return %c0_i32, %c0_i32_0 : i32, i32
  }
  func.func @transform_5(%arg0: i32) -> (i32, i32) {
    %c0_i32 = arith.constant 0 : i32
    %c0_i32_0 = arith.constant 0 : i32
    %c0_i32_1 = arith.constant 0 : i32
    return %c0_i32, %c0_i32_0 : i32, i32
  }
  func.func @transform_6(%arg0: i32) -> i32 {
    %c0_i32 = arith.constant 0 : i32
    %c0_i32_0 = arith.constant 0 : i32
    return %c0_i32 : i32
  }
  func.func @transform_7(%arg0: i32) -> (i32, i32) {
    %c0_i32 = arith.constant 0 : i32
    %c0_i32_0 = arith.constant 0 : i32
    %c0_i32_1 = arith.constant 0 : i32
    return %c0_i32, %c0_i32_0 : i32, i32
  }
}

</mosaic_0001>

<bundles_post_ra>
// kernel: tpu_custom_call.1
= control target key start
LH: loop header
LB: loop body
LE: loop exit
PB: predicated region body
PF: predicated region fallthrough
CT: control target
= control target key end

     0   :  { %s1815_s0 = inlined_call_operand.vmem [shape: f32[2,10], index: 0, kind: input, shape index: {}]   ;;  %s1816_s1 = inlined_call_operand.vmem [shape: s32[2,1], index: 1, kind: input, shape index: {}]   ;;  %s1817_s2 = inlined_call_operand.hbm [shape: f32[2,1,16,16], index: 2, kind: input, shape index: {}]   ;;  %s1818_s3 = inlined_call_operand.hbm [shape: f32[2,1,16,16], index: 3, kind: input, shape index: {}]   ;;  %s1819_s4 = inlined_call_operand.hbm [shape: f32[80,80], index: 4, kind: input, shape index: {}]   ;;  %s1820_s5 = inlined_call_operand.vmem [shape: f32[16,16], index: 5, kind: input, shape index: {}]   ;;  %s1821_s6 = inlined_call_operand.vmem [shape: f32[2], index: 6, kind: input, shape index: {}]   ;;  %s1822_s7 = inlined_call_operand.hbm [shape: f32[1,1], index: 7, kind: output, shape index: {}]  }
   0x1   :  { %1830 = sst [smem:[#allocation21_spill]] %s1817_s2 }
   0x2   :  { %1831 = sst [smem:[#allocation22_spill]] %s1819_s4 }
   0x3   :  { %1832 = sst [smem:[#allocation23_spill]] %s1821_s6 }
   0x4   :  { %12 = vsyncpa [#allocation8], 0 }
   0x5   :  { %14 = vsyncpa [#allocation8 + $0x1], 0 }
   0x6   :  { %15 = vsyncpa [#allocation12], 0 }
   0x7   :  { %17 = vsyncpa [#allocation12 + $0x1], 0 }
   0x8   :  { %18 = vsyncpa [#allocation10], 0 }
   0x9   :  { %19 = vsyncpa [#allocation9], 0  ;;  %s1478_s24 = smov 0   ;;  %s1480_s25 = smov 0  }
   0xa   :  { %s1482_s26 = smov 0   ;;  %s1484_s27 = smov 0  }
   0xb LB: > { %s1497_s28 = sadd.s32 4294967295, %s1425_s27   ;;  %p87_p0 = scmp.ne.s32.totalorder %s1417_s25, %s1413_s24  ;;  %s1425_s27 = sphi %s1484_s27, %s1852_s27   ;;  %s1421_s26 = sphi %s1482_s26, %s1851_s26   ;;  %s1417_s25 = sphi %s1480_s25, %s1850_s25   ;;  %s1413_s24 = sphi %s1478_s24, %s1849_s24  }
   0xc   : > { %p1823_p1 = scmp.eq.s32.totalorder %s1497_s28, 0  ;;  %p993_p2 = scmp.ge.s32.totalorder %s1425_s27, 1 }
   0xd   : > { %p208_p3 = scmp.lt.s32.totalorder %s1425_s27, 3  ;;  %s1427_s8 = smov [#allocation13]  }
   0xe   : > { %p1506_p5 = por %p1823_p1, %p87_p0  ;;  %s226_s9 = sshll.u32 %s1427_s8, 4  ;;  %s227_s9 = int_to_ptr.vmem [resolvable:$true] %s226_s9 }
   0xf   : > { %p1510_p6 = pnand %p993_p2, %p208_p3  ;;  %s1835_s6 = sld [smem:[#allocation23_spill]] }
  0x10   : > { %s1833_s29 = scalar_select %p1506_p5, 1, 0 }
  0x11   : > { %s1834_s30 = scalar_select %p1510_p6, 1, 0 }
  0x12   : > { %p1173_p7 = pneg %p1510_p6  ;;  %s1837_s4 = sld [smem:[#allocation22_spill]] }
  0x14   : > { %p1521_p8 = pnand %p1173_p7, %p1823_p1 }
  0x15   : > { %s243_s12 = sshll.u32 %s1835_s6, 4  ;;  %s1525_s12 = int_to_ptr.vmem [resolvable:$true] %s243_s12 }
  0x16   : > { %p1248_p10 = pneg %p1521_p8 }
  0x18   : > { %s1246_s16 = scalar_lea.hbm %s1837_s4, 1280 }
  0x19   : > { %p1247_p9 = scmp.ne.s32.totalorder %s1837_s4, %s1246_s16  ;;  %p1253_p13 = scmp.lt.u32.totalorder %s1246_s16, %s1837_s4 }
  0x1b   : > { %p1249_p11 = pnand %p1248_p10, %p1247_p9 }
  0x1d   : > { %p1250_p12 = pneg %p1249_p11 }
  0x1f   : > { %p1255_p0 = pnand %p1253_p13, %p1250_p12 }
  0x21   : > { %1258 = shalt.err (!%p1255_p0)
}
  0x22   : > { %s1259_s21 = scalar_lea.vmem %s227_s9, 1280  ;;  %p1267_p4 = scmp.lt.s32.totalorder %s227_s9, %s227_s9 }
  0x23   : > { %p1260_p2 = scmp.ne.s32.totalorder %s227_s9, %s1259_s21  ;;  %p1268_p1 = scmp.lt.s32.totalorder %s1259_s21, %s1259_s21 }
  0x25   : > { %p1262_p3 = pnand %p1260_p2, %p1248_p10  ;;  %p1269_p5 = por %p1268_p1, %p1267_p4 }
  0x27   : > { %p1263_p7 = pneg %p1262_p3 }
  0x29   : > { %p1270_p6 = pnand %p1269_p5, %p1263_p7 }
  0x2b   : > { %1273 = shalt.err (!%p1270_p6)
}
  0x2c   : > { %s1826_s22 = smov 128   ;;  %s1828_s23 = smov 8  }
  0x2d   : > { %1176 = dma.hbm_to_vmem [thread:$0]  (!%p1521_p8), %s1837_s4, 1280, %s227_s9, [#allocation12], %s1826_s22, %s1826_s22, %s1828_s23  }
  0x2e   : > { %s1274_s10 = scalar_lea.vmem %s1525_s12, 16  ;;  %p1282_p5 = scmp.lt.s32.totalorder %s1525_s12, %s1525_s12 }
  0x2f   : > { %p1275_p9 = scmp.ne.s32.totalorder %s1525_s12, %s1274_s10  ;;  %p1283_p6 = scmp.lt.s32.totalorder %s1274_s10, %s1274_s10 }
  0x31   : > { %p1277_p1 = pnand %p1275_p9, %p1248_p10  ;;  %p1284_p11 = por %p1283_p6, %p1282_p5 }
  0x33   : > { %p1278_p4 = pneg %p1277_p1 }
  0x35   : > { %p1285_p12 = pnand %p1284_p11, %p1278_p4 }
  0x37   : > { %1288 = shalt.err (!%p1285_p12)
}
  0x38   : > { %s1430_s11 = smov [#allocation14]   ;;  %s1563_s9 = sadd.s32 1, %s1425_s27  }
  0x39   : > { %1179 = dma.vmem_to_smem (!%p1521_p8), %s1525_s12, 16, %s1430_s11, [#allocation10]  }
  0x3a   : > { %s74_s14 = sadd.s32 1, %s1421_s26  ;;  %s71_s15 = ssub.s32 %s1425_s27, %s1563_s9 }
  0x3b   : > { %p81_p10 = scmp.ne.s32.totalorder %s1421_s26, %s1417_s25  ;;  %p72_p13 = scmp.eq.s32.totalorder %s71_s15, 0 }
  0x3c   : > { %p82_p0 = scmp.eq.s32.totalorder %s1425_s27, 0  ;;  %p1189_p2 = scmp.lt.s32.totalorder %s1425_s27, 2 }
  0x3d   : > { %s254_s13 = sand.u32 1, %s1421_s26   ;;  %s1035_s18 = sshll.u32 %s1425_s27, 8 }
  0x3e   : > { %s1574_s16 = scalar_select %p72_p13, %s1421_s26, %s74_s14  }
  0x3f   : > { %p83_p3 = por %p82_p0, %p81_p10  ;;  %s1576_s17 = sshll.u32 %s254_s13, 4 }
  0x40   : > { %s1838_s2 = sld [smem:[#allocation21_spill]]  ;;  %s258_s21 = scalar_lea.vmem [#allocation7], %s1576_s17 }
  0x41   : > { %s265_s24 = sshll.u32 %s258_s21, 4  ;;  %p1585_p8 = pnand %p1189_p2, %p83_p3  ;;  %s1589_s24 = int_to_ptr.vmem [resolvable:$true] %s265_s24 }
  0x42   : > { %s1594_s14 = scalar_lea.hbm %s1818_s3, %s1035_s18  ;;  %s1596_s15 = scalar_lea.sflag [#allocation8], %s254_s13 }
  0x43   : > { %p1291_p9 = pneg %p1585_p8 }
  0x46   : > { %s1582_s12 = scalar_lea.hbm %s1838_s2, %s1035_s18  ;;  %s1294_s22 = scalar_lea.hbm %s1838_s2, 512 }
  0x47   : > { %s1289_s19 = scalar_lea.hbm %s1582_s12, 256  ;;  %p1295_p5 = scmp.lt.u32.totalorder %s1582_s12, %s1838_s2 }
  0x48   : > { %p1290_p7 = scmp.ne.s32.totalorder %s1582_s12, %s1289_s19  ;;  %p1296_p6 = scmp.lt.u32.totalorder %s1294_s22, %s1289_s19 }
  0x49   : > { %p1298_p12 = scmp.lt.u32.totalorder %s1289_s19, %s1582_s12 }
  0x4a   : > { %p1292_p1 = pnand %p1291_p9, %p1290_p7  ;;  %p1297_p11 = por %p1296_p6, %p1295_p5 }
  0x4c   : > { %p1293_p4 = pneg %p1292_p1  ;;  %p1299_p10 = por %p1298_p12, %p1297_p11 }
  0x4e   : > { %p1300_p13 = pnand %p1299_p10, %p1293_p4 }
  0x50   : > { %1303 = shalt.err (!%p1300_p13)
}
  0x51   : > { %s1304_s13 = scalar_lea.vmem %s1589_s24, 256  ;;  %s1431_s18 = smov [#allocation7]  }
  0x52   : > { %p1305_p0 = scmp.ne.s32.totalorder %s1589_s24, %s1304_s13  ;;  %s1309_s10 = sshll.u32 %s1431_s18, 4  ;;  %s1310_s10 = int_to_ptr.vmem [resolvable:$false] %s1309_s10 }
  0x53   : > { %s1311_s4 = scalar_lea.vmem %s1310_s10, 512  ;;  %p1312_p7 = scmp.lt.s32.totalorder %s1589_s24, %s1310_s10 }
  0x54   : > { %p1307_p2 = pnand %p1305_p0, %p1291_p9  ;;  %p1313_p1 = scmp.lt.s32.totalorder %s1311_s4, %s1304_s13 }
  0x56   : > { %p1308_p3 = pneg %p1307_p2  ;;  %p1314_p5 = por %p1313_p1, %p1312_p7 }
  0x58   : > { %p1315_p6 = pnand %p1314_p5, %p1308_p3 }
  0x5a   : > { %1318 = shalt.err (!%p1315_p6)
}
  0x5b   : > { %s1840_s22 = smov 8   ;;  %s1841_s23 = smov 128  }
  0x5c   : > { %1183 = dma.hbm_to_vmem [thread:$0]  (!%p1585_p8), %s1582_s12, 256, %s1589_s24, %s1596_s15, %s1841_s23, %s1841_s23, %s1840_s22  }
  0x5d   : > { %s279_s11 = scalar_lea.vmem [#allocation11], %s1576_s17  ;;  %s275_s20 = sand.u32 1, %s1425_s27  }
  0x5e   : > { %s286_s19 = sshll.u32 %s279_s11, 4  ;;  %s1631_s21 = scalar_lea.sflag [#allocation12], %s275_s20  ;;  %s1629_s19 = int_to_ptr.vmem [resolvable:$true] %s286_s19 }
  0x5f   : > { %s1319_s13 = scalar_lea.hbm %s1594_s14, 256  ;;  %s1324_s4 = scalar_lea.hbm %s1818_s3, 512 }
  0x60   : > { %p1320_p4 = scmp.ne.s32.totalorder %s1594_s14, %s1319_s13  ;;  %p1325_p10 = scmp.lt.u32.totalorder %s1594_s14, %s1818_s3 }
  0x61   : > { %p1326_p13 = scmp.lt.u32.totalorder %s1324_s4, %s1319_s13  ;;  %p1328_p2 = scmp.lt.u32.totalorder %s1319_s13, %s1594_s14 }
  0x62   : > { %p1322_p11 = pnand %p1320_p4, %p1291_p9 }
  0x63   : > { %p1327_p0 = por %p1326_p13, %p1325_p10 }
  0x64   : > { %p1323_p12 = pneg %p1322_p11 }
  0x65   : > { %p1329_p3 = por %p1328_p2, %p1327_p0 }
  0x67   : > { %p1330_p7 = pnand %p1329_p3, %p1323_p12 }
  0x69   : > { %1333 = shalt.err (!%p1330_p7)
}
  0x6a   : > { %s1334_s27 = scalar_lea.vmem %s1629_s19, 256  ;;  %s1432_s17 = smov [#allocation11]  }
  0x6b   : > { %p1335_p1 = scmp.ne.s32.totalorder %s1629_s19, %s1334_s27  ;;  %s1339_s12 = sshll.u32 %s1432_s17, 4  ;;  %s1340_s12 = int_to_ptr.vmem [resolvable:$false] %s1339_s12 }
  0x6c   : > { %s1341_s2 = scalar_lea.vmem %s1340_s12, 512  ;;  %p1342_p4 = scmp.lt.s32.totalorder %s1629_s19, %s1340_s12 }
  0x6d   : > { %p1337_p5 = pnand %p1335_p1, %p1291_p9  ;;  %p1343_p11 = scmp.lt.s32.totalorder %s1341_s2, %s1334_s27 }
  0x6f   : > { %p1338_p6 = pneg %p1337_p5  ;;  %p1344_p10 = por %p1343_p11, %p1342_p4 }
  0x71   : > { %p1345_p13 = pnand %p1344_p10, %p1338_p6 }
  0x73   : > { %1348 = shalt.err (!%p1345_p13)
}
  0x74   : > { %1186 = dma.hbm_to_vmem [thread:$0]  (!%p1585_p8), %s1594_s14, 256, %s1629_s19, %s1631_s21, %s1841_s23, %s1841_s23, %s1840_s22  }
  0x75   : > { %p1842_p9 = scmp.ne.s32.totalorder %s1834_s30, 0 }
  0x76   : > { %s300_s6 = sand.u32 (!%p1842_p9), 1, %s1417_s25   ;;  %p1843_p12 = scmp.ne.s32.totalorder (!%p1842_p9), %s1833_s29, 0 }
  0x77   : > { %298 = sbr.rel (%p1842_p9) target bundleno = 1138 (0x472), region = 48  ;;  %s1663_s24 = sshll.u32 (!%p1842_p9), %s300_s6, 4 }
  0x78   : > { %s301_s15 = scalar_lea.sflag (!%p1842_p9), [#allocation8], %s300_s6  ;;  %s304_s11 = scalar_lea.vmem (!%p1842_p9), [#allocation7], %s1663_s24 }
  0x7e   : > { %1392 = dma.done.wait (%p1843_p12), %s301_s15, 256  }
  0x7f   : > { %1394 = vsyncadd (%p1843_p12), %s301_s15, 4294967040  ;;  %s309_s8 = sand.u32 1, %s1497_s28   ;;  %s313_s30 = scalar_lea.vmem [#allocation11], %s1663_s24 }
  0x80   : > { %s310_s14 = scalar_lea.sflag [#allocation12], %s309_s8 }
  0x81   : > { %1396 = dma.done.wait (%p1843_p12), %s310_s14, 256  }
  0x82   : > { %1398 = vsyncadd (%p1843_p12), %s310_s14, 4294967040  ;;  %p1844_p8 = scmp.eq.s32.totalorder %s1497_s28, 0 }
  0x84   : > { %1400 = dma.done.wait (%p1844_p8), [#allocation12], 1280   ;;  %p1845_p0 = pmov %p1844_p8 }
  0x86   : > { %1402 = vsyncadd (%p1845_p0), [#allocation12], 4294966016  ;;  %p1846_p2 = pmov %p1845_p0 }
  0x87   : > { %p1847_p3 = pmov %p1845_p0 }
  0x88   : > { %1404 = dma.done.wait (%p1846_p2), [#allocation10], 16  }
  0x89   : > { %1406 = vsyncadd (%p1847_p3), [#allocation10], 4294967280 }
  0x8a   : > { %326 = sfence }
  0x8b   : > { %p1848_p7 = scmp.ne.s32.totalorder %s1497_s28, 0 }
  0x8c   : > { %v363_v0 = vld [vmem:[%s1816_s1] sm:$0x3] (!%p1848_p7)  ;;  %v1433_v1 = vmov (!%p1848_p7), 0   ;;  %v364_v2 = vlaneseq (!%p1848_p7)  ;;  %vm371_vm0 = vcmask (!%p1848_p7), 74752   ;;  %vm357_vm2 = vcmask (!%p1848_p7), 0  }
  0x8d   : > { %356 = sbr.rel (%p1848_p7) target bundleno = 435 (0x1b3), region = 68  ;;  %1235 = vset.pattern.permute.xlu0 (!%p1848_p7), %v1433_v1  ;;  %v362_v4 = vld [vmem:[%s1815_s0] sm:$0x3] (!%p1848_p7)  ;;  %v1434_v10 = vmov (!%p1848_p7), 0.0   ;;  %vm382_vm3 = vcmask (!%p1848_p7), 1041408  }
  0x8e   : > { %367 = vperm.xlu0 (!%p1848_p7), %1235, %v363_v0   ;;  %v365_v3 = vand.u32 (!%p1848_p7), 127, %v364_v2  ;;  %358 = vst.msk [vmem:[#allocation2] sm:$0x1] (!%p1848_p7), %vm357_vm2, %v1434_v10  ;;  %359 = vst.msk [vmem:[#allocation3] sm:$0x1] (!%p1848_p7), %vm357_vm2, %v1434_v10 }
  0x8f   : > { %360 = vst.msk [vmem:[#allocation4] sm:$0x1] (!%p1848_p7), %vm357_vm2, %v1434_v10  ;;  %361 = vst.msk [vmem:[#allocation5] sm:$0x1] (!%p1848_p7), %vm357_vm2, %v1434_v10 }
 0x10d   : > { %v368_v5 = vpop.permute.xlu0 %367 }
 0x10e   : > { %vm369_vm1 = vcmp.eq.s32.totalorder %v365_v3, %v368_v5 }
 0x10f   : > { %v375_v6 = vsel %vm369_vm1, -3.4028235e+38, %v362_v4  ;;  %v370_v7 = vsel %vm369_vm1, %v362_v4, 0.0 }
 0x110   : > { %v376_v8 = vsel %vm371_vm0, %v375_v6, -inf  ;;  %v372_v9 = vsel %vm371_vm0, %v370_v7, 0.0 }
 0x111   : > { %377 = vmax.xlane.f32.xlu1 %v376_v8  ;;  %373 = vadd.xlane.f32.xlu0 %v372_v9 }
 0x19e   : > { %v378_v11 = vpop.xlane.xlu1 %377  ;;  %v374_v12 = vpop.xlane.xlu0 %373 }
 0x19f   : > { %v379_v13 = vsub.f32 %v374_v12, %v378_v11 }
 0x1a1   : > { %v380_v14 = vadd.f32 0.05, %v379_v13 }
 0x1a3   : > { %v381_v15 = vmax.f32 %v380_v14, 0.0 }
 0x1a5   : > { %v383_v16 = vsel %vm382_vm3, %v381_v15, 0.0 }
 0x1a6   : > { %v384_v17 = vrot.slane %v383_v16, 4 }
 0x1a8   : > { %v385_v18 = vadd.f32 %v384_v17, %v383_v16 }
 0x1aa   : > { %v386_v19 = vrot.slane %v385_v18, 2 }
 0x1ac   : > { %v387_v20 = vadd.f32 %v386_v19, %v385_v18 }
 0x1ae   : > { %v388_v21 = vrot.slane %v387_v20, 1 }
 0x1b0   : > { %v389_v22 = vadd.f32 %v388_v21, %v387_v20 }
 0x1b2   : > { %390 = vst.msk [vmem:[#allocation6] sm:$0x1] %vm357_vm2, %v389_v22 }
 0x1b3 PF: > { %v403_v23 = vld [vmem:[%s1820_s5] sm:$0xff]  ;;  %v404_v24 = vld [vmem:[%s1820_s5 + $0x8] sm:$0xff]  ;;  %vm405_vm4 = vcmask 130048   ;;  %s1435_s10 = smov 1   ;;  %vm561_vm5 = vcmask 654336   ;;  %vm821_vm6 = vcmask 130056  }
 0x1b4   : > { %v391_v25 = vld [vmem:[%s304_s11] sm:$0xff]  ;;  %v1123_v26 = vpack.c.bf16 %v404_v24, %v403_v23  ;;  %v392_v29 = vld [vmem:[%s304_s11 + $0x8] sm:$0xff]  ;;  %s1436_s4 = smov 127   ;;  %vm743_vm7 = vcmask 1040384   ;;  %vm797_vm8 = vcmask 1046528   ;;  %vm804_vm9 = vcmask 129024  }
 0x1b5   : > { %v1707_v27 = vld [vmem:[%s313_s30] sm:$0xff]  ;;  %1073 = vmatprep.mubr.msk.f32.mxu0 %vm405_vm4, %v391_v25  ;;  %v1717_v30 = vld [vmem:[%s313_s30 + $0x8] sm:$0xff]  ;;  %v397_v32 = vmul.f32 %v391_v25, %v391_v25  ;;  %v398_v33 = vmul.f32 %v392_v29, %v392_v29  ;;  %vm835_vm10 = vcmask 121856   ;;  %vm773_vm11 = vcmask 0   ;;  %p1029_p1 = scmp.ne.s32.totalorder %s1497_s28, 1 }
 0x1b6   : > { %1124 = vmatprep.subr.bf16.mxu0 %v1123_v26  ;;  %v1711_v28 = vadd.f32 %v1707_v27, %v391_v25  ;;  %v1720_v31 = vadd.f32 %v1717_v30, %v392_v29  ;;  %v551_v38 = vld [vmem:[#allocation13] sm:$0xff]  ;;  %v552_v2 = vld [vmem:[#allocation13 + $0x8] sm:$0xff]  ;;  %v553_v4 = vld [vmem:[#allocation13 + $0x10] sm:$0xff]  ;;  %v776_v16 = vmul.f32 %v1707_v27, %v1707_v27  ;;  %v777_v17 = vmul.f32 %v1717_v30, %v1717_v30  ;;  %s845_s27 = sld [smem:[#allocation14]] (!%p1029_p1)  ;;  %s1030_s17 = sld [smem:[#allocation14 + $0x1]] (!%p1029_p1) }
 0x1b7   : > { %1126 = vmatpush3.bf16.msra.mxu0 %v1123_v26  ;;  %v555_v39 = vld [vmem:[#allocation13 + $0x20] sm:$0xff]  ;;  %v556_v3 = vld [vmem:[#allocation13 + $0x28] sm:$0xff]  ;;  %v557_v5 = vld [vmem:[#allocation13 + $0x30] sm:$0xff] }
 0x1b8   : > { %v399_v34 = vmul.f32 %v1711_v28, %v1711_v28  ;;  %v400_v35 = vmul.f32 %v1720_v31, %v1720_v31  ;;  %v401_v36 = vmul.f32 %v1711_v28, %v391_v25  ;;  %v402_v37 = vmul.f32 %v1720_v31, %v392_v29  ;;  %751 = vrot.lane.b32.xlu0 %v1711_v28, %s1435_s10  ;;  %v554_v8 = vld [vmem:[#allocation13 + $0x18] sm:$0xff]  ;;  %v559_v10 = vld [vmem:[#allocation13 + $0x40] sm:$0xff]  ;;  %v560_v13 = vld [vmem:[#allocation13 + $0x48] sm:$0xff] }
 0x1b9   : > { %1114 = vmatprep.mubr.msk.f32.mxu1 %vm561_vm5, %v555_v39  ;;  %v558_v9 = vld [vmem:[#allocation13 + $0x38] sm:$0xff]  ;;  %v744_v14 = vrot.slane %v1711_v28, 7  ;;  %v745_v15 = vrot.slane %v1720_v31, 7  ;;  %v778_v23 = vsel %vm405_vm4, %v776_v16, 0.0  ;;  %v779_v24 = vsel %vm405_vm4, %v777_v17, 0.0 }
 0x1ba   : > { %1074 = vmatmul.mubr.msk.f32.vlgmr.msra.gmra.mrb[0].mxu0 %vm405_vm4, %v392_v29  ;;  %v780_v25 = vadd.f32 %v779_v24, %v778_v23 }
 0x1bb   : > { %1076 = vmatprep.mubr.msk.f32.mxu0 %vm405_vm4, %v1711_v28  ;;  %v746_v18 = vsel %vm743_vm7, %v744_v14, %v745_v15  ;;  %v749_v19 = vsub.f32 %v1711_v28, %v744_v14 }
 0x1bc   : > { %753 = vrot.lane.b32.xlu0 %v1720_v31, %s1435_s10  ;;  %v750_v20 = vsub.f32 %v1720_v31, %v746_v18  ;;  %s847_s12 = smul.f32 (!%p1029_p1), 0.01, %s845_s27 }
 0x1bd   : > { %v793_v21 = vmul.f32 %v749_v19, %v749_v19  ;;  %s854_s2 = smul.f32 (!%p1029_p1), 0.5, %s1030_s17 }
 0x1be   : > { %1077 = vmatmul.mubr.msk.f32.gmra.mrb[2].mxu0 %vm405_vm4, %v1720_v31  ;;  %v794_v22 = vmul.f32 %v750_v20, %v750_v20 }
 0x1bf   : > { %1079 = vmatprep.mubr.msk.f32.mxu0 %vm405_vm4, %v397_v32  ;;  %v798_v26 = vrot.slane %v793_v21, 1  ;;  %v781_v32 = vrot.slane %v780_v25, 4 }
 0x1c0   : > { %v799_v29 = vrot.slane %v794_v22, 1 }
 0x1c2   : > { %1080 = vmatmul.mubr.msk.f32.gmra.mrb[4].mxu0 %vm405_vm4, %v398_v33  ;;  %v800_v27 = vsel %vm797_vm8, %v798_v26, %v799_v29  ;;  %v805_v33 = vsel %vm804_vm9, %v799_v29, 0.0 }
 0x1c3   : > { %1082 = vmatprep.mubr.msk.f32.mxu0 %vm405_vm4, %v399_v34  ;;  %v803_v30 = vsel %vm405_vm4, %v800_v27, 0.0  ;;  %v782_v34 = vadd.f32 %v781_v32, %v780_v25 }
 0x1c6   : > { %1083 = vmatmul.mubr.msk.f32.gmra.mrb[6].mxu0 %vm405_vm4, %v400_v35  ;;  %v783_v35 = vrot.slane %v782_v34, 2 }
 0x1c7   : > { %1085 = vmatprep.mubr.msk.f32.mxu0 %vm405_vm4, %v401_v36 }
 0x1c8   : > { %v784_v36 = vadd.f32 %v783_v35, %v782_v34 }
 0x1ca   : > { %1086 = vmatmul.mubr.msk.f32.gmra.mrb[8].mxu0 %vm405_vm4, %v402_v37 }
 0x1cb   : > { %1108 = vmatprep.mubr.msk.f32.mxu0 %vm561_vm5, %v551_v38  ;;  %v785_v38 = vrot.slane %v784_v36, 1 }
 0x22a   : > { %v752_v46 = vpop.permute.xlu0 %751 }
 0x22b   : > { %v757_v47 = vsub.f32 %v1711_v28, %v752_v46  ;;  %v806_v28 = vadd.f32 %v805_v33, %v803_v30 }
 0x22d   : > { %v819_v50 = vmul.f32 %v757_v47, %v757_v47 }
 0x22e   : > { %v754_v52 = vpop.permute.xlu0 %753 }
 0x22f   : > { %v758_v53 = vsub.f32 %v1720_v31, %v754_v52  ;;  %v822_v56 = vsel %vm821_vm6, %v819_v50, 0.0  ;;  %v807_v31 = vrot.slane %v806_v28, 4 }
 0x231   : > { %v820_v57 = vmul.f32 %v758_v53, %v758_v53  ;;  %v808_v37 = vadd.f32 %v807_v31, %v806_v28 }
 0x233   : > { %v823_v59 = vsel %vm821_vm6, %v820_v57, 0.0  ;;  %v809_v39 = vrot.slane %v808_v37, 2 }
 0x234   : > { %v824_v61 = vadd.f32 %v823_v59, %v822_v56 }
 0x236   : > { %v825_v0 = vrot.slane %v824_v61, 4 }
 0x238   : > { %v826_v1 = vadd.f32 %v825_v0, %v824_v61 }
 0x23a   : > { %v827_v6 = vrot.slane %v826_v1, 2 }
 0x23c   : > { %v828_v7 = vadd.f32 %v827_v6, %v826_v1 }
 0x23e   : > { %v829_v11 = vrot.slane %v828_v7, 1 }
 0x240   : > { %v830_v12 = vadd.f32 %v829_v11, %v828_v7 }
 0x242   : > { %832 = vrot.lane.b32.xlu1 %v830_v12, %s1436_s4 }
 0x28d   : > { %v1075_v40 = vpop.f32.mrb[0].mxu0 }
 0x28e   : > { %v502_v41 = vpop.f32.mrb[1].mxu0 }
 0x28f   : > { %v1127_v42 = vpack.c.bf16 %v1075_v40, %v502_v41  ;;  %v786_v40 = vadd.f32 %v785_v38, %v784_v36  ;;  %v810_v41 = vadd.f32 %v809_v39, %v808_v37 }
 0x291   : > { %v1078_v43 = vpop.f32.mrb[2].mxu0  ;;  %1128 = vmatprep.subr.bf16.mxu0 %v1127_v42  ;;  %1147 = vmatprep.subr.bf16.mxu1 %v1127_v42 }
 0x292   : > { %v512_v44 = vpop.f32.mrb[3].mxu0  ;;  %1130 = vmatpush3.bf16.msra.mxu0 %v1127_v42  ;;  %1152 = vmatpush3.bf16.msra.mxu1 %v1127_v42  ;;  %v787_v42 = vsel %vm405_vm4, %v786_v40, 0.0  ;;  %v775_v40 = vld [vmem:[#allocation3] sm:$0x1] }
 0x293   : > { %v1131_v45 = vpack.c.bf16 %v1078_v43, %v512_v44  ;;  %v811_v43 = vrot.slane %v810_v41, 1  ;;  %788 = vadd.xlane.f32.xlu0 %v787_v42 }
 0x295   : > { %v1081_v48 = vpop.f32.mrb[4].mxu0  ;;  %1132 = vmatprep.subr.bf16.mxu0 %v1131_v45  ;;  %1148 = vmatprep.subr.bf16.mxu1 %v1131_v45  ;;  %v812_v44 = vadd.f32 %v811_v43, %v810_v41  ;;  %v792_v43 = vld [vmem:[#allocation4] sm:$0x1] }
 0x296   : > { %v522_v49 = vpop.f32.mrb[5].mxu0  ;;  %1134 = vmatpush3.bf16.msra.mxu0 %v1131_v45  ;;  %1153 = vmatpush3.bf16.msra.mxu1 %v1131_v45 }
 0x297   : > { %v1135_v51 = vpack.c.bf16 %v1081_v48, %v522_v49  ;;  %v813_v45 = vsel %vm405_vm4, %v812_v44, 0.0 }
 0x298   : > { %814 = vadd.xlane.f32.xlu0 %v813_v45 }
 0x299   : > { %v1084_v54 = vpop.f32.mrb[6].mxu0  ;;  %1136 = vmatprep.subr.bf16.mxu0 %v1135_v51  ;;  %1149 = vmatprep.subr.bf16.mxu1 %v1135_v51 }
 0x29a   : > { %v532_v55 = vpop.f32.mrb[7].mxu0  ;;  %1138 = vmatpush3.bf16.msra.mxu0 %v1135_v51  ;;  %1154 = vmatpush3.bf16.msra.mxu1 %v1135_v51 }
 0x29b   : > { %v1139_v58 = vpack.c.bf16 %v1084_v54, %v532_v55 }
 0x29d   : > { %v1087_v60 = vpop.f32.mrb[8].mxu0  ;;  %1140 = vmatprep.subr.bf16.mxu0 %v1139_v58  ;;  %1150 = vmatprep.subr.bf16.mxu1 %v1139_v58 }
 0x29e   : > { %v542_v62 = vpop.f32.mrb[9].mxu0  ;;  %1142 = vmatpush3.bf16.msra.mxu0 %v1139_v58  ;;  %1155 = vmatpush3.bf16.msra.mxu1 %v1139_v58 }
 0x29f   : > { %v1143_v63 = vpack.c.bf16 %v1087_v60, %v542_v62 }
 0x2a1   : > { %1144 = vmatprep.subr.bf16.mxu0 %v1143_v63  ;;  %1151 = vmatprep.subr.bf16.mxu1 %v1143_v63 }
 0x2a2   : > { %1146 = vmatpush3.bf16.msra.mxu0 %v1143_v63  ;;  %1156 = vmatpush3.bf16.msra.mxu1 %v1143_v63 }
 0x2a5   : > { %1109 = vmatmul.mubr.msk.f32.vlgmr.msra.gmra.mrb[10].mxu0 %vm561_vm5, %v552_v2  ;;  %1115 = vmatmul.mubr.msk.f32.vlgmr.msra.gmra.mrb[0].mxu1 %vm561_vm5, %v556_v3 }
 0x2a6   : > { %1111 = vmatprep.mubr.msk.f32.mxu0 %vm561_vm5, %v553_v4  ;;  %1117 = vmatprep.mubr.msk.f32.mxu1 %vm561_vm5, %v557_v5 }
 0x2a9   : > { %1112 = vmatmul.mubr.msk.f32.gmra.mrb[12].mxu0 %vm561_vm5, %v554_v8  ;;  %1118 = vmatmul.mubr.msk.f32.gmra.mrb[2].mxu1 %vm561_vm5, %v558_v9 }
 0x2aa   : > { %1120 = vmatprep.mubr.msk.f32.mxu1 %vm561_vm5, %v559_v10 }
 0x2ad   : > { %1121 = vmatmul.mubr.msk.f32.gmra.mrb[4].mxu1 %vm561_vm5, %v560_v13 }
 0x2b4   : > { %v833_v38 = vpop.permute.xlu1 %832 }
 0x2b5   : > { %v836_v39 = vsel %vm835_vm10, %v833_v38, 0.0 }
 0x320   : > { %v789_v41 = vpop.xlane.xlu0 %788 }
 0x321   : > { %v790_v42 = vadd.f32 %v789_v41, %v775_v40 }
 0x323   : > { %791 = vst.msk [vmem:[#allocation3] sm:$0x1] %vm773_vm11, %v790_v42 }
 0x325   : > { %v815_v44 = vpop.xlane.xlu0 %814 }
 0x326   : > { %v816_v45 = vadd.f32 %v815_v44, %v792_v43 }
 0x328   : > { %817 = vst.msk [vmem:[#allocation4] sm:$0x1] %vm773_vm11, %v816_v45 }
 0x378   : > { %v1110_v46 = vpop.f32.mrb[10].mxu0  ;;  %v1116_v47 = vpop.f32.mrb[0].mxu1 }
 0x379   : > { %v708_v48 = vmul.f32 %v1110_v46, %v1110_v46  ;;  %v658_v49 = vpop.f32.mrb[11].mxu0  ;;  %v678_v50 = vpop.f32.mrb[1].mxu1 }
 0x37a   : > { %v707_v51 = vmul.f32 %v658_v49, %v658_v49 }
 0x37b   : > { %v714_v52 = vsub.f32 %v1116_v47, %v708_v48 }
 0x37c   : > { %v713_v53 = vsub.f32 %v678_v50, %v707_v51  ;;  %v1113_v54 = vpop.f32.mrb[12].mxu0  ;;  %v1119_v55 = vpop.f32.mrb[2].mxu1 }
 0x37d   : > { %v710_v56 = vmul.f32 %v1113_v54, %v1113_v54  ;;  %v712_v57 = vmul.f32 %v1113_v54, %v1110_v46  ;;  %v668_v58 = vpop.f32.mrb[13].mxu0  ;;  %v688_v59 = vpop.f32.mrb[3].mxu1  ;;  %v759_v46 = vld [vmem:[#allocation2] sm:$0x1] }
 0x37e   : > { %v709_v60 = vmul.f32 %v668_v58, %v668_v58  ;;  %v711_v61 = vmul.f32 %v668_v58, %v658_v49  ;;  %v818_v49 = vld [vmem:[#allocation5] sm:$0x1]  ;;  %v852_v58 = vstv (!%p1029_p1), %s847_s12 }
 0x37f   : > { %v730_v62 = vadd.f32 %v710_v56, %v708_v48  ;;  %v716_v63 = vsub.f32 %v1119_v55, %v710_v56  ;;  %v720_v3 = vmul.f32 2.0, %v712_v57 }
 0x380   : > { %v729_v0 = vadd.f32 %v709_v60, %v707_v51  ;;  %v715_v1 = vsub.f32 %v688_v59, %v709_v60  ;;  %v1122_v2 = vpop.f32.mrb[4].mxu1  ;;  %v719_v7 = vmul.f32 2.0, %v711_v61  ;;  %v884_v59 = vld [vmem:[#allocation6] sm:$0x1] (!%p1029_p1) }
 0x381   : > { %v734_v4 = vadd.f32 %v716_v63, %v714_v52  ;;  %v718_v5 = vsub.f32 %v1122_v2, %v712_v57  ;;  %v698_v6 = vpop.f32.mrb[5].mxu1  ;;  %v732_v10 = vadd.f32 0.0001, %v730_v62  ;;  %v722_v16 = vadd.f32 0.0001, %v720_v3 }
 0x382   : > { %v733_v8 = vadd.f32 %v715_v1, %v713_v53  ;;  %v717_v9 = vsub.f32 %v698_v6, %v711_v61  ;;  %v731_v13 = vadd.f32 0.0001, %v729_v0  ;;  %v721_v19 = vadd.f32 0.0001, %v719_v7  ;;  %v855_v52 = vld [vmem:[#allocation3] sm:$0x1] (!%p1029_p1) }
 0x383   : > { %v736_v11 = vadd.f32 0.0009, %v734_v4  ;;  %v724_v12 = vmul.f32 2.0, %v718_v5  ;;  %v865_v53 = vld [vmem:[#allocation4] sm:$0x1] (!%p1029_p1)  ;;  %vm858_vm12 = vcmp.eq.f32.partialorder (!%p1029_p1), %v855_v52, inf  ;;  %v863_v4 = vstv (!%p1029_p1), %s854_s2 }
 0x384   : > { %v735_v14 = vadd.f32 0.0009, %v733_v8  ;;  %v723_v15 = vmul.f32 2.0, %v717_v9  ;;  %vm860_vm13 = vcmp.eq.f32.partialorder (!%p1029_p1), %v855_v52, 0.0  ;;  %v861_v61 = vand.u32 (!%p1029_p1), 2147483648, %v855_v52 }
 0x385   : > { %v738_v17 = vmul.f32 %v736_v11, %v732_v10  ;;  %v726_v18 = vadd.f32 0.0009, %v724_v12  ;;  %vm868_vm14 = vcmp.eq.f32.partialorder (!%p1029_p1), %v865_v53, inf  ;;  %vm870_vm15 = vcmp.eq.f32.partialorder (!%p1029_p1), %v865_v53, 0.0 }
 0x386   : > { %v737_v20 = vmul.f32 %v735_v14, %v731_v13  ;;  %v725_v21 = vadd.f32 0.0009, %v723_v15  ;;  %v871_v1 = vand.u32 (!%p1029_p1), 2147483648, %v865_v53  ;;  %v886_v2 = vmul.f32 (!%p1029_p1), 0.5, %v884_v59 }
 0x387   : > { %1236 = vrcp.f32 %v738_v17  ;;  %v728_v22 = vmul.f32 %v726_v18, %v722_v16 }
 0x388   : > { %1238 = vrcp.f32 %v737_v20  ;;  %v727_v23 = vmul.f32 %v725_v21, %v721_v19 }
 0x389   : > { %1240 = vrsqrt.f32 (!%p1029_p1), %v855_v52 }
 0x38a   : > { %1242 = vrsqrt.f32 (!%p1029_p1), %v865_v53 }
 0x391   : > { %v1237_v24 = vpop.eup %1236 }
 0x392   : > { %v1239_v25 = vpop.eup %1238  ;;  %v742_v26 = vmul.f32 %v1237_v24, %v728_v22 }
 0x393   : > { %v740_v29 = vmul.f32 %v1239_v25, %v727_v23  ;;  %v1241_v60 = vpop.eup (!%p1029_p1), %1240 }
 0x394   : > { %v761_v32 = vsel %vm405_vm4, %v742_v26, 0.0  ;;  %v1243_v62 = vpop.eup (!%p1029_p1), %1242  ;;  %v857_v0 = vmul.f32 (!%p1029_p1), %v1241_v60, %v855_v52 }
 0x395   : > { %v760_v27 = vsel %vm405_vm4, %v740_v29, 0.0  ;;  %v867_v5 = vmul.f32 (!%p1029_p1), %v1243_v62, %v865_v53 }
 0x396   : > { %v762_v30 = vadd.f32 %v761_v32, %v760_v27  ;;  %v859_v7 = vsel (!%p1029_p1), %vm858_vm12, %v855_v52, %v857_v0 }
 0x397   : > { %v862_v9 = vsel (!%p1029_p1), %vm860_vm13, %v861_v61, %v859_v7  ;;  %v869_v10 = vsel (!%p1029_p1), %vm868_vm14, %v865_v53, %v867_v5 }
 0x398   : > { %v763_v33 = vrot.slane %v762_v30, 4  ;;  %v864_v11 = vmul.f32 (!%p1029_p1), %v863_v4, %v862_v9  ;;  %v872_v12 = vsel (!%p1029_p1), %vm870_vm15, %v871_v1, %v869_v10 }
 0x39a   : > { %v764_v34 = vadd.f32 %v763_v33, %v762_v30 }
 0x39c   : > { %v765_v28 = vrot.slane %v764_v34, 2 }
 0x39e   : > { %v766_v35 = vadd.f32 %v765_v28, %v764_v34 }
 0x3a0   : > { %v767_v31 = vrot.slane %v766_v35, 1 }
 0x3a2   : > { %v768_v36 = vadd.f32 %v767_v31, %v766_v35 }
 0x3a4   : > { %v769_v37 = vsel %vm405_vm4, %v768_v36, 0.0 }
 0x3a5   : > { %770 = vadd.xlane.f32.xlu1 %v769_v37 }
 0x3a9   : > { %837 = vadd.xlane.f32.xlu1 %v836_v39 }
 0x432   : > { %v771_v47 = vpop.xlane.xlu1 %770 }
 0x433   : > { %v772_v48 = vadd.f32 %v771_v47, %v759_v46  ;;  %844 = sbr.rel (%p1029_p1) target bundleno = 1113 (0x459), region = 72 }
 0x435   : > { %774 = vst.msk [vmem:[#allocation2] sm:$0x1] %vm773_vm11, %v772_v48 }
 0x436   : > { %v838_v50 = vpop.xlane.xlu1 %837 }
 0x437   : > { %v839_v51 = vadd.f32 %v838_v50, %v818_v49 }
 0x439   : > { %840 = vst.msk [vmem:[#allocation5] sm:$0x1] %vm773_vm11, %v839_v51 }
 0x43c   : > { %v848_v54 = vld [vmem:[#allocation2] sm:$0x1] }
 0x43d   : > { %v850_v56 = vmul.f32 0.001953125, %v848_v54 }
 0x43f   : > { %v851_v57 = vsub.f32 1.0, %v850_v56 }
 0x440   : > { %v873_v55 = vld [vmem:[#allocation5] sm:$0x1] }
 0x441   : > { %1244 = vrsqrt.f32 %v873_v55  ;;  %v853_v63 = vmul.f32 %v852_v58, %v851_v57  ;;  %vm876_vm0 = vcmp.eq.f32.partialorder %v873_v55, inf  ;;  %v879_v6 = vand.u32 2147483648, %v873_v55 }
 0x442   : > { %vm878_vm1 = vcmp.eq.f32.partialorder %v873_v55, 0.0 }
 0x443   : > { %v887_v14 = vadd.f32 %v886_v2, %v853_v63 }
 0x445   : > { %v888_v18 = vadd.f32 %v887_v14, %v864_v11 }
 0x44b   : > { %v1245_v3 = vpop.eup %1244 }
 0x44c   : > { %v875_v8 = vmul.f32 %v1245_v3, %v873_v55 }
 0x44e   : > { %v877_v13 = vsel %vm876_vm0, %v873_v55, %v875_v8 }
 0x44f   : > { %v880_v15 = vsel %vm878_vm1, %v879_v6, %v877_v13 }
 0x450   : > { %v881_v16 = vadd.f32 %v880_v15, %v872_v12 }
 0x452   : > { %v882_v17 = vmul.f32 500.0, %v881_v16 }
 0x454   : > { %v883_v19 = vmul.f32 0.001953125, %v882_v17 }
 0x456   : > { %v889_v20 = vadd.f32 %v888_v18, %v883_v19 }
 0x458   : > { %890 = vst.msk [vmem:[#allocation15] sm:$0x1] %vm773_vm11, %v889_v20 }
 0x459 PF: > { %p1192_p5 = scmp.eq.s32.totalorder %s1497_s28, 1  ;;  %s1437_s6 = smov [#allocation15]  }
 0x45a   : > { %s898_s24 = sshll.u32 %s1437_s6, 4  ;;  %s899_s24 = int_to_ptr.vmem [resolvable:$true] %s898_s24 }
 0x45b   : > { %s1349_s15 = scalar_lea.vmem %s899_s24, 16  ;;  %s1355_s11 = scalar_lea.vmem %s899_s24, 32 }
 0x45c   : > { %p1350_p6 = scmp.ne.s32.totalorder %s899_s24, %s1349_s15  ;;  %p1356_p10 = scmp.lt.s32.totalorder %s899_s24, %s899_s24 }
 0x45d   : > { %p1357_p13 = scmp.lt.s32.totalorder %s1355_s11, %s1349_s15 }
 0x45e   : > { %p1351_p4 = pnand %p1350_p6, %p1192_p5 }
 0x45f   : > { %p1358_p9 = por %p1357_p13, %p1356_p10 }
 0x460   : > { %p1352_p11 = pneg %p1351_p4 }
 0x462   : > { %p1359_p12 = pnand %p1358_p9, %p1352_p11 }
 0x464   : > { %1362 = shalt.err (!%p1359_p12)
}
 0x465   : > { %s1363_s30 = scalar_lea.hbm %s1822_s7, 16 }
 0x466   : > { %p1364_p8 = scmp.ne.s32.totalorder %s1822_s7, %s1363_s30  ;;  %p1369_p3 = scmp.lt.u32.totalorder %s1363_s30, %s1822_s7 }
 0x468   : > { %p1365_p0 = pnand %p1364_p8, %p1192_p5 }
 0x46a   : > { %p1366_p2 = pneg %p1365_p0 }
 0x46c   : > { %p1371_p7 = pnand %p1369_p3, %p1366_p2 }
 0x46e   : > { %1374 = shalt.err (!%p1371_p7)
}
 0x46f   : > { %1170 = dma.vmem_to_hbm [thread:$0]  (%p1192_p5), %s899_s24, 16, %s1822_s7, [#allocation9]  }
 0x470   : > { %1408 = dma.done.wait (%p1192_p5), [#allocation9], 16  }
 0x471   : > { %1410 = vsyncadd (%p1192_p5), [#allocation9], 4294967280 }
 0x472 PF: > { %p22_p1 = scmp.ge.s32.totalorder %s1563_s9, 4   ;;  %s1849_s24 = smov %s1417_s25 }
 0x473   : > { %s1850_s25 = smov %s1421_s26  ;;  %s1851_s26 = smov %s1574_s16 }
 0x474   : > { %s1852_s27 = smov %s1563_s9  ;;  %24 = sbr.rel (!%p22_p1) target bundleno = 11 (0xb), region = 115 }
 0x47b   :  { %911 = vsyncpa [#allocation8], 1 }
 0x47c   :  { %913 = vsyncpa [#allocation8 + $0x1], 1 }
 0x47d   :  { %914 = vsyncpa [#allocation12], 1 }
 0x47e   :  { %916 = vsyncpa [#allocation12 + $0x1], 1 }
 0x47f   :  { %917 = vsyncpa [#allocation9], 1 }
 0x480   :  { %919 = vsyncpa [#allocation9 + $0x1], 1 }
 0x481   :  { %920 = vsyncpa [#allocation10], 1 }
 0x482   :  { %922 = vsyncpa [#allocation10 + $0x1], 1 }

</bundles_post_ra>
